<compile_context>
chip_gen: v7x
topology: tpu7x:2x2x1
jax: 0.10.0
libtpu: 0.0.40
codegen_flags: <defaults>
</compile_context>

<pallas_src>
import functools

import numpy as np
import jax
import jax.numpy as jnp
from jax import lax
from jax.experimental import pallas as pl
from jax.experimental.pallas import tpu as pltpu


def _interp_matrix(out_size, in_size):
    """PyTorch bilinear (align_corners=False, half-pixel) as a dense matrix."""
    i = np.arange(out_size, dtype=np.float64)
    src = (i + 0.5) * (in_size / out_size) - 0.5
    src = np.maximum(src, 0.0)
    i0 = np.minimum(np.floor(src).astype(np.int64), in_size - 1)
    i1 = np.minimum(i0 + 1, in_size - 1)
    w1 = src - i0
    w0 = 1.0 - w1
    M = np.zeros((out_size, in_size), dtype=np.float32)
    M[np.arange(out_size), i0] += w0
    M[np.arange(out_size), i1] += w1
    return M


@functools.lru_cache(maxsize=None)
def _bmt_np(H, W, Hin, Win):
    """Fused interpolation matrix kron(Wr, Wc)^T, shape (Hin*Win, H*W)."""
    return np.ascontiguousarray(
        np.kron(_interp_matrix(H, Hin), _interp_matrix(W, Win)).T.astype(np.float32))


@functools.lru_cache(maxsize=None)
def _masks_np(H, W):
    """Static boundary masks for the 9 depthwise-3x3 taps, shape (9, 1, H*W)."""
    HW = H * W
    row = np.arange(HW) // W
    col = np.arange(HW) % W
    masks = np.zeros((9, 1, HW), np.float32)
    k = 0
    for dh in (-1, 0, 1):
        for dw in (-1, 0, 1):
            valid = ((row + dh >= 0) & (row + dh <= H - 1) &
                     (col + dw >= 0) & (col + dw <= W - 1))
            masks[k, 0, :] = valid.astype(np.float32)
            k += 1
    return masks


def _pick_nb(n, max_nb=16):
    """Largest divisor of n (<= max_nb) that keeps >= 2 grid steps when n > 1."""
    best = 1
    for d in range(1, n + 1):
        if d > max_nb:
            break
        if n % d == 0 and (n // d >= 2 or n == 1):
            best = d
    return best


def _final_block_kernel(x_ref, h_ref, bmt_ref, masks_ref,
                        w1_ref, b1_ref, w2t_ref, b2_ref, w3_ref, b3_ref,
                        w4_ref, b4_ref, w5_ref, b5_ref, out_ref, *, W):
    Nb = out_ref.shape[0]
    HW = out_ref.shape[2]
    f32 = jnp.float32

    # Nb is small and static; unrolled loop over the samples of this block.
    for s in range(Nb):
        xs = x_ref[s].astype(f32)                       # (Cin, HWin)
        hs = h_ref[s].astype(f32)                       # (Cout, HW)

        # --- fused bilinear upsample: (Cin, HWin) @ (HWin, HW) on the MXU ---
        xup = jnp.dot(xs, bmt_ref[...], preferred_element_type=f32)

        # --- conv1 (1x1): weights on the left -> lane-dense N = HW ---
        x1 = jnp.dot(w1_ref[...], xup, preferred_element_type=f32) + b1_ref[...]

        # --- squeeze-excite gate: mean -> conv2+relu -> conv3+sigmoid (VPU/XLU) ---
        m = jnp.mean(x1 + hs, axis=1, keepdims=True)    # (Cout, 1)
        g_row = jnp.maximum(
            jnp.sum(w2t_ref[...] * m, axis=0, keepdims=True) + b2_ref[...], 0.0)
        g_col = jax.nn.sigmoid(
            jnp.sum(w3_ref[...] * g_row, axis=1, keepdims=True) + b3_ref[...])

        # --- conv4 (1x1) + relu ---
        t = x1 + hs * g_col
        h1 = jnp.maximum(
            jnp.dot(w4_ref[...], t, preferred_element_type=f32) + b4_ref[...], 0.0)

        # --- conv5: depthwise 3x3, padding=1, via lane rolls + static masks ---
        acc = None
        for ti, dh in enumerate((-1, 0, 1)):
            for tj, dw in enumerate((-1, 0, 1)):
                k = ti * 3 + tj
                d = dh * W + dw
                tap = h1 if d == 0 else pltpu.roll(h1, shift=(-d) % HW, axis=1)
                if (dh, dw) != (0, 0):
                    tap = tap * masks_ref[k]            # (1, HW) precomputed mask
                term = tap * w5_ref[k]                  # (Cout, 1) per-channel tap
                acc = term if acc is None else acc + term
        h2 = jnp.maximum(acc + b5_ref[...], 0.0)

        out_ref[s] = (h1 + h2).astype(out_ref.dtype)


@functools.partial(jax.jit, static_argnames=("interp_size",))
def selfie_final_block(x, h, kparams, *, interp_size):
    """x: (N, Cin, Hin, Win) NCHW; h: (N, Cout, H, W) NCHW. Returns NCHW."""
    N, Cin, Hin, Win = x.shape
    Nh, Cout, H, W = h.shape
    assert Nh == N and (H, W) == tuple(interp_size)
    HWin, HW = Hin * Win, H * W

    Nb = _pick_nb(N)                                   # samples per grid step
    bmt = jnp.asarray(_bmt_np(H, W, Hin, Win))         # compile-time constants
    masks = jnp.asarray(_masks_np(H, W))

    # Free reshapes only; no transposes, no wrapper-side dtype casts.
    x3 = x.reshape(N, Cin, HWin)
    h3 = h.reshape(N, Cout, HW)

    (w1, b1, w2t, b2, w3, b3, w4, b4, w5, b5) = kparams

    def full_spec(shape):
        return pl.BlockSpec(shape, lambda n, _nd=len(shape): (0,) * _nd)

    kernel = functools.partial(_final_block_kernel, W=W)

    isz = lambda a: jnp.dtype(a.dtype).itemsize
    cost = pl.CostEstimate(
        flops=2 * N * HW * (Cin * HWin + Cout * Cin + Cout * Cout + 9 * Cout),
        transcendentals=N * Cout,
        bytes_accessed=N * Cin * HWin * isz(x) + 2 * N * Cout * HW * isz(h),
    )

    out = pl.pallas_call(
        kernel,
        out_shape=jax.ShapeDtypeStruct((N, Cout, HW), h.dtype),
        grid_spec=pltpu.PrefetchScalarGridSpec(
            num_scalar_prefetch=0,
            grid=(N // Nb,),
            in_specs=[
                pl.BlockSpec((Nb, Cin, HWin), lambda n: (n, 0, 0)),
                pl.BlockSpec((Nb, Cout, HW), lambda n: (n, 0, 0)),
                full_spec(bmt.shape), full_spec(masks.shape),
                full_spec(w1.shape), full_spec(b1.shape),
                full_spec(w2t.shape), full_spec(b2.shape),
                full_spec(w3.shape), full_spec(b3.shape),
                full_spec(w4.shape), full_spec(b4.shape),
                full_spec(w5.shape), full_spec(b5.shape),
            ],
            out_specs=pl.BlockSpec((Nb, Cout, HW), lambda n: (n, 0, 0)),
        ),
        compiler_params=pltpu.CompilerParams(dimension_semantics=("parallel",)),
        cost_estimate=cost,
    )(x3, h3, bmt, masks, w1, b1, w2t, b2, w3, b3, w4, b4, w5, b5)

    return out.reshape(N, Cout, H, W)                  # free reshape back to NCHW


# ---------------- parameters (deterministic, PyTorch-style init) ----------------

def init_params(key, cin, cout):
    ks = jax.random.split(key, 10)

    def u(k, shape, fan_in):
        bound = 1.0 / np.sqrt(fan_in)
        return jax.random.uniform(k, shape, jnp.float32, -bound, bound)

    return {
        'W1': u(ks[0], (cout, cin, 1, 1), cin),   'b1': u(ks[1], (cout,), cin),
        'W2': u(ks[2], (cout, cout, 1, 1), cout), 'b2': u(ks[3], (cout,), cout),
        'W3': u(ks[4], (cout, cout, 1, 1), cout), 'b3': u(ks[5], (cout,), cout),
        'W4': u(ks[6], (cout, cout, 1, 1), cout), 'b4': u(ks[7], (cout,), cout),
        'W5': u(ks[8], (cout, 1, 3, 3), 9),       'b5': u(ks[9], (cout,), 9),
    }


def to_kernel_params(p):
    cout = p['W1'].shape[0]
    col = lambda b: b.reshape(cout, 1)
    w1 = p['W1'][:, :, 0, 0]                                  # (Cout, Cin)  weights-left
    w2t = jnp.transpose(p['W2'][:, :, 0, 0])                  # (in, out) for VPU gate
    w3 = p['W3'][:, :, 0, 0]                                  # (out, in)
    w4 = p['W4'][:, :, 0, 0]                                  # (out, in)
    w5 = jnp.transpose(p['W5'][:, 0].reshape(cout, 9))[:, :, None]   # (9, Cout, 1)
    return (w1, col(p['b1']), w2t, p['b2'].reshape(1, cout), w3, col(p['b3']),
            w4, col(p['b4']), w5, col(p['b5']))


# ---------------- pure-JAX reference (NCHW, mirrors the PyTorch module) ----------------

def ref_forward(x, h, p, interp_size):
    N, Cin, Hin, Win = x.shape
    Cout = h.shape[1]
    H, W = interp_size
    Wr = jnp.asarray(_interp_matrix(H, Hin))
    Wc = jnp.asarray(_interp_matrix(W, Win))
    xup = jnp.einsum('oh,nchw,pw->ncop', Wr, x, Wc)

    def conv1x1(t, wt, bt):
        return jnp.einsum('oc,nchw->nohw', wt[:, :, 0, 0], t) + bt[None, :, None, None]

    x1 = conv1x1(xup, p['W1'], p['b1'])
    s = x1 + h
    m = jnp.mean(s, axis=(2, 3), keepdims=True)
    g = jax.nn.relu(conv1x1(m, p['W2'], p['b2']))
    g = jax.nn.sigmoid(conv1x1(g, p['W3'], p['b3']))
    h1 = h * g
    h1 = jax.nn.relu(conv1x1(x1 + h1, p['W4'], p['b4']))
    h2 = lax.conv_general_dilated(h1, p['W5'], (1, 1), ((1, 1), (1, 1)),
                                  feature_group_count=Cout,
                                  dimension_numbers=('NCHW', 'OIHW', 'NCHW'))
    h2 = jax.nn.relu(h2 + p['b5'][None, :, None, None])
    return h1 + h2


if __name__ == "__main__":
    key = jax.random.PRNGKey(0)
    kx, kh, kp = jax.random.split(key, 3)

    N, Cin, Cout = 2, 4, 8
    Hin, Win = 8, 8
    interp_size = (16, 16)

    x = jax.random.normal(kx, (N, Cin, Hin, Win), jnp.float32)
    h = jax.random.normal(kh, (N, Cout, interp_size[0], interp_size[1]), jnp.float32)

    params = init_params(kp, Cin, Cout)
    kparams = to_kernel_params(params)

    out = jax.block_until_ready(selfie_final_block(x, h, kparams, interp_size=interp_size))
    ref = jax.block_until_ready(ref_forward(x, h, params, interp_size))

    np.testing.assert_allclose(np.asarray(out), np.asarray(ref), rtol=1e-5, atol=1e-5)
    print("KERNEL_OK")
</pallas_src>

<mosaic_0001>
module attributes {stable_mosaic.version = 11 : i64} {
  func.func @_final_block_kernel(%arg0: i32, %arg1: memref<1x4x64xf32, #tpu.memory_space<vmem>>, %arg2: memref<1x8x256xf32, #tpu.memory_space<vmem>>, %arg3: memref<64x256xf32, #tpu.memory_space<vmem>>, %arg4: memref<9x1x256xf32, #tpu.memory_space<vmem>>, %arg5: memref<8x4xf32, #tpu.memory_space<vmem>>, %arg6: memref<8x1xf32, #tpu.memory_space<vmem>>, %arg7: memref<8x8xf32, #tpu.memory_space<vmem>>, %arg8: memref<1x8xf32, #tpu.memory_space<vmem>>, %arg9: memref<8x8xf32, #tpu.memory_space<vmem>>, %arg10: memref<8x1xf32, #tpu.memory_space<vmem>>, %arg11: memref<8x8xf32, #tpu.memory_space<vmem>>, %arg12: memref<8x1xf32, #tpu.memory_space<vmem>>, %arg13: memref<9x8x1xf32, #tpu.memory_space<vmem>>, %arg14: memref<8x1xf32, #tpu.memory_space<vmem>>, %arg15: memref<1x8x256xf32, #tpu.memory_space<vmem>>) attributes {dimension_semantics = [#tpu.dimension_semantics<parallel>], iteration_bounds = array<i64: 2>, scalar_prefetch = 0 : i64, scratch_operands = 0 : i64, tpu.core_type = #tpu.core_type<tc>, window_params = [{transform_indices = @transform_0, window_bounds = array<i64: 1, 4, 64>}, {transform_indices = @transform_1, window_bounds = array<i64: 1, 8, 256>}, {pipeline_mode = #tpu.pipeline_mode<synchronous>, transform_indices = @transform_2, window_bounds = array<i64: 64, 256>}, {pipeline_mode = #tpu.pipeline_mode<synchronous>, transform_indices = @transform_3, window_bounds = array<i64: 9, 1, 256>}, {pipeline_mode = #tpu.pipeline_mode<synchronous>, transform_indices = @transform_4, window_bounds = array<i64: 8, 4>}, {pipeline_mode = #tpu.pipeline_mode<synchronous>, transform_indices = @transform_5, window_bounds = array<i64: 8, 1>}, {pipeline_mode = #tpu.pipeline_mode<synchronous>, transform_indices = @transform_6, window_bounds = array<i64: 8, 8>}, {pipeline_mode = #tpu.pipeline_mode<synchronous>, transform_indices = @transform_7, window_bounds = array<i64: 1, 8>}, {pipeline_mode = #tpu.pipeline_mode<synchronous>, transform_indices = @transform_8, window_bounds = array<i64: 8, 8>}, {pipeline_mode = #tpu.pipeline_mode<synchronous>, transform_indices = @transform_9, window_bounds = array<i64: 8, 1>}, {pipeline_mode = #tpu.pipeline_mode<synchronous>, transform_indices = @transform_10, window_bounds = array<i64: 8, 8>}, {pipeline_mode = #tpu.pipeline_mode<synchronous>, transform_indices = @transform_11, window_bounds = array<i64: 8, 1>}, {pipeline_mode = #tpu.pipeline_mode<synchronous>, transform_indices = @transform_12, window_bounds = array<i64: 9, 8, 1>}, {pipeline_mode = #tpu.pipeline_mode<synchronous>, transform_indices = @transform_13, window_bounds = array<i64: 8, 1>}, {transform_indices = @transform_14, window_bounds = array<i64: 1, 8, 256>}]} {
    %c0 = arith.constant 0 : index
    %c0_0 = arith.constant 0 : index
    %c0_1 = arith.constant 0 : index
    %0 = vector.load %arg1[%c0, %c0_0, %c0_1] : memref<1x4x64xf32, #tpu.memory_space<vmem>>, vector<1x4x64xf32>
    %1 = vector.shape_cast %0 : vector<1x4x64xf32> to vector<4x64xf32>
    %c0_2 = arith.constant 0 : index
    %c0_3 = arith.constant 0 : index
    %c0_4 = arith.constant 0 : index
    %2 = vector.load %arg2[%c0_2, %c0_3, %c0_4] : memref<1x8x256xf32, #tpu.memory_space<vmem>>, vector<1x8x256xf32>
    %3 = vector.shape_cast %2 : vector<1x8x256xf32> to vector<8x256xf32>
    %c0_5 = arith.constant 0 : index
    %c0_6 = arith.constant 0 : index
    %4 = vector.load %arg3[%c0_5, %c0_6] : memref<64x256xf32, #tpu.memory_space<vmem>>, vector<64x256xf32>
    %cst = arith.constant dense<0.000000e+00> : vector<4x256xf32>
    %5 = tpu.matmul %1, %4, %cst {dimension_numbers = #tpu.dot_dimension_numbers<[1], [0], [0], [1], [0, 0, 1, 1], [], []>} : vector<4x64xf32>, vector<64x256xf32>, vector<4x256xf32> -> vector<4x256xf32>
    %c0_7 = arith.constant 0 : index
    %c0_8 = arith.constant 0 : index
    %6 = vector.load %arg5[%c0_7, %c0_8] : memref<8x4xf32, #tpu.memory_space<vmem>>, vector<8x4xf32>
    %cst_9 = arith.constant dense<0.000000e+00> : vector<8x256xf32>
    %7 = tpu.matmul %6, %5, %cst_9 {dimension_numbers = #tpu.dot_dimension_numbers<[1], [0], [0], [1], [0, 0, 1, 1], [], []>} : vector<8x4xf32>, vector<4x256xf32>, vector<8x256xf32> -> vector<8x256xf32>
    %c0_10 = arith.constant 0 : index
    %c0_11 = arith.constant 0 : index
    %8 = vector.load %arg6[%c0_10, %c0_11] : memref<8x1xf32, #tpu.memory_space<vmem>>, vector<8x1xf32>
    %9 = vector.broadcast %8 : vector<8x1xf32> to vector<8x256xf32>
    %10 = arith.addf %7, %9 : vector<8x256xf32>
    %11 = arith.addf %10, %3 : vector<8x256xf32>
    %cst_12 = arith.constant dense<0.000000e+00> : vector<8xf32>
    %12 = vector.multi_reduction <add>, %11, %cst_12 [1] : vector<8x256xf32> to vector<8xf32>
    %13 = vector.shape_cast %12 : vector<8xf32> to vector<8x1xf32>
    %cst_13 = arith.constant 2.560000e+02 : f32
    %14 = vector.broadcast %cst_13 : f32 to vector<8x1xf32>
    %15 = arith.divf %13, %14 : vector<8x1xf32>
    %c0_14 = arith.constant 0 : index
    %c0_15 = arith.constant 0 : index
    %16 = vector.load %arg7[%c0_14, %c0_15] : memref<8x8xf32, #tpu.memory_space<vmem>>, vector<8x8xf32>
    %17 = vector.broadcast %15 : vector<8x1xf32> to vector<8x8xf32>
    %18 = arith.mulf %16, %17 : vector<8x8xf32>
    %cst_16 = arith.constant dense<0.000000e+00> : vector<8xf32>
    %19 = vector.multi_reduction <add>, %18, %cst_16 [0] : vector<8x8xf32> to vector<8xf32>
    %20 = vector.shape_cast %19 : vector<8xf32> to vector<1x8xf32>
    %c0_17 = arith.constant 0 : index
    %c0_18 = arith.constant 0 : index
    %21 = vector.load %arg8[%c0_17, %c0_18] : memref<1x8xf32, #tpu.memory_space<vmem>>, vector<1x8xf32>
    %22 = arith.addf %20, %21 : vector<1x8xf32>
    %cst_19 = arith.constant 0.000000e+00 : f32
    %23 = vector.broadcast %cst_19 : f32 to vector<1x8xf32>
    %24 = arith.maximumf %22, %23 : vector<1x8xf32>
    %c0_20 = arith.constant 0 : index
    %c0_21 = arith.constant 0 : index
    %25 = vector.load %arg9[%c0_20, %c0_21] : memref<8x8xf32, #tpu.memory_space<vmem>>, vector<8x8xf32>
    %26 = vector.broadcast %24 : vector<1x8xf32> to vector<8x8xf32>
    %27 = arith.mulf %25, %26 : vector<8x8xf32>
    %cst_22 = arith.constant dense<0.000000e+00> : vector<8xf32>
    %28 = vector.multi_reduction <add>, %27, %cst_22 [1] : vector<8x8xf32> to vector<8xf32>
    %29 = vector.shape_cast %28 : vector<8xf32> to vector<8x1xf32>
    %c0_23 = arith.constant 0 : index
    %c0_24 = arith.constant 0 : index
    %30 = vector.load %arg10[%c0_23, %c0_24] : memref<8x1xf32, #tpu.memory_space<vmem>>, vector<8x1xf32>
    %31 = arith.addf %29, %30 : vector<8x1xf32>
    %32 = arith.negf %31 : vector<8x1xf32>
    %33 = math.exp %32 : vector<8x1xf32>
    %cst_25 = arith.constant 1.000000e+00 : f32
    %34 = vector.broadcast %cst_25 : f32 to vector<8x1xf32>
    %35 = arith.addf %34, %33 : vector<8x1xf32>
    %36 = arith.divf %34, %35 : vector<8x1xf32>
    %37 = vector.broadcast %36 : vector<8x1xf32> to vector<8x256xf32>
    %38 = arith.mulf %3, %37 : vector<8x256xf32>
    %39 = arith.addf %10, %38 : vector<8x256xf32>
    %c0_26 = arith.constant 0 : index
    %c0_27 = arith.constant 0 : index
    %40 = vector.load %arg11[%c0_26, %c0_27] : memref<8x8xf32, #tpu.memory_space<vmem>>, vector<8x8xf32>
    %cst_28 = arith.constant dense<0.000000e+00> : vector<8x256xf32>
    %41 = tpu.matmul %40, %39, %cst_28 {dimension_numbers = #tpu.dot_dimension_numbers<[1], [0], [0], [1], [0, 0, 1, 1], [], []>} : vector<8x8xf32>, vector<8x256xf32>, vector<8x256xf32> -> vector<8x256xf32>
    %c0_29 = arith.constant 0 : index
    %c0_30 = arith.constant 0 : index
    %42 = vector.load %arg12[%c0_29, %c0_30] : memref<8x1xf32, #tpu.memory_space<vmem>>, vector<8x1xf32>
    %43 = vector.broadcast %42 : vector<8x1xf32> to vector<8x256xf32>
    %44 = arith.addf %41, %43 : vector<8x256xf32>
    %cst_31 = arith.constant 0.000000e+00 : f32
    %45 = vector.broadcast %cst_31 : f32 to vector<8x256xf32>
    %46 = arith.maximumf %44, %45 : vector<8x256xf32>
    %c17_i32 = arith.constant 17 : i32
    %47 = tpu.dynamic_rotate %46 by %c17_i32 dim 1 : vector<8x256xf32>, i32 -> vector<8x256xf32>
    %c0_32 = arith.constant 0 : index
    %c0_33 = arith.constant 0 : index
    %c0_34 = arith.constant 0 : index
    %48 = vector.load %arg4[%c0_32, %c0_33, %c0_34] : memref<9x1x256xf32, #tpu.memory_space<vmem>>, vector<1x1x256xf32>
    %49 = vector.shape_cast %48 : vector<1x1x256xf32> to vector<1x256xf32>
    %50 = vector.broadcast %49 : vector<1x256xf32> to vector<8x256xf32>
    %51 = arith.mulf %47, %50 : vector<8x256xf32>
    %c0_35 = arith.constant 0 : index
    %c0_36 = arith.constant 0 : index
    %c0_37 = arith.constant 0 : index
    %52 = vector.load %arg13[%c0_35, %c0_36, %c0_37] : memref<9x8x1xf32, #tpu.memory_space<vmem>>, vector<1x8x1xf32>
    %53 = vector.shape_cast %52 : vector<1x8x1xf32> to vector<8x1xf32>
    %54 = vector.broadcast %53 : vector<8x1xf32> to vector<8x256xf32>
    %55 = arith.mulf %51, %54 : vector<8x256xf32>
    %c16_i32 = arith.constant 16 : i32
    %56 = tpu.dynamic_rotate %46 by %c16_i32 dim 1 : vector<8x256xf32>, i32 -> vector<8x256xf32>
    %c1 = arith.constant 1 : index
    %c0_38 = arith.constant 0 : index
    %c0_39 = arith.constant 0 : index
    %57 = vector.load %arg4[%c1, %c0_38, %c0_39] : memref<9x1x256xf32, #tpu.memory_space<vmem>>, vector<1x1x256xf32>
    %58 = vector.shape_cast %57 : vector<1x1x256xf32> to vector<1x256xf32>
    %59 = vector.broadcast %58 : vector<1x256xf32> to vector<8x256xf32>
    %60 = arith.mulf %56, %59 : vector<8x256xf32>
    %c1_40 = arith.constant 1 : index
    %c0_41 = arith.constant 0 : index
    %c0_42 = arith.constant 0 : index
    %61 = vector.load %arg13[%c1_40, %c0_41, %c0_42] : memref<9x8x1xf32, #tpu.memory_space<vmem>>, vector<1x8x1xf32>
    %62 = vector.shape_cast %61 : vector<1x8x1xf32> to vector<8x1xf32>
    %63 = vector.broadcast %62 : vector<8x1xf32> to vector<8x256xf32>
    %64 = arith.mulf %60, %63 : vector<8x256xf32>
    %65 = arith.addf %55, %64 : vector<8x256xf32>
    %c15_i32 = arith.constant 15 : i32
    %66 = tpu.dynamic_rotate %46 by %c15_i32 dim 1 : vector<8x256xf32>, i32 -> vector<8x256xf32>
    %c2 = arith.constant 2 : index
    %c0_43 = arith.constant 0 : index
    %c0_44 = arith.constant 0 : index
    %67 = vector.load %arg4[%c2, %c0_43, %c0_44] : memref<9x1x256xf32, #tpu.memory_space<vmem>>, vector<1x1x256xf32>
    %68 = vector.shape_cast %67 : vector<1x1x256xf32> to vector<1x256xf32>
    %69 = vector.broadcast %68 : vector<1x256xf32> to vector<8x256xf32>
    %70 = arith.mulf %66, %69 : vector<8x256xf32>
    %c2_45 = arith.constant 2 : index
    %c0_46 = arith.constant 0 : index
    %c0_47 = arith.constant 0 : index
    %71 = vector.load %arg13[%c2_45, %c0_46, %c0_47] : memref<9x8x1xf32, #tpu.memory_space<vmem>>, vector<1x8x1xf32>
    %72 = vector.shape_cast %71 : vector<1x8x1xf32> to vector<8x1xf32>
    %73 = vector.broadcast %72 : vector<8x1xf32> to vector<8x256xf32>
    %74 = arith.mulf %70, %73 : vector<8x256xf32>
    %75 = arith.addf %65, %74 : vector<8x256xf32>
    %c1_i32 = arith.constant 1 : i32
    %76 = tpu.dynamic_rotate %46 by %c1_i32 dim 1 : vector<8x256xf32>, i32 -> vector<8x256xf32>
    %c3 = arith.constant 3 : index
    %c0_48 = arith.constant 0 : index
    %c0_49 = arith.constant 0 : index
    %77 = vector.load %arg4[%c3, %c0_48, %c0_49] : memref<9x1x256xf32, #tpu.memory_space<vmem>>, vector<1x1x256xf32>
    %78 = vector.shape_cast %77 : vector<1x1x256xf32> to vector<1x256xf32>
    %79 = vector.broadcast %78 : vector<1x256xf32> to vector<8x256xf32>
    %80 = arith.mulf %76, %79 : vector<8x256xf32>
    %c3_50 = arith.constant 3 : index
    %c0_51 = arith.constant 0 : index
    %c0_52 = arith.constant 0 : index
    %81 = vector.load %arg13[%c3_50, %c0_51, %c0_52] : memref<9x8x1xf32, #tpu.memory_space<vmem>>, vector<1x8x1xf32>
    %82 = vector.shape_cast %81 : vector<1x8x1xf32> to vector<8x1xf32>
    %83 = vector.broadcast %82 : vector<8x1xf32> to vector<8x256xf32>
    %84 = arith.mulf %80, %83 : vector<8x256xf32>
    %85 = arith.addf %75, %84 : vector<8x256xf32>
    %c4 = arith.constant 4 : index
    %c0_53 = arith.constant 0 : index
    %c0_54 = arith.constant 0 : index
    %86 = vector.load %arg13[%c4, %c0_53, %c0_54] : memref<9x8x1xf32, #tpu.memory_space<vmem>>, vector<1x8x1xf32>
    %87 = vector.shape_cast %86 : vector<1x8x1xf32> to vector<8x1xf32>
    %88 = vector.broadcast %87 : vector<8x1xf32> to vector<8x256xf32>
    %89 = arith.mulf %46, %88 : vector<8x256xf32>
    %90 = arith.addf %85, %89 : vector<8x256xf32>
    %c255_i32 = arith.constant 255 : i32
    %91 = tpu.dynamic_rotate %46 by %c255_i32 dim 1 : vector<8x256xf32>, i32 -> vector<8x256xf32>
    %c5 = arith.constant 5 : index
    %c0_55 = arith.constant 0 : index
    %c0_56 = arith.constant 0 : index
    %92 = vector.load %arg4[%c5, %c0_55, %c0_56] : memref<9x1x256xf32, #tpu.memory_space<vmem>>, vector<1x1x256xf32>
    %93 = vector.shape_cast %92 : vector<1x1x256xf32> to vector<1x256xf32>
    %94 = vector.broadcast %93 : vector<1x256xf32> to vector<8x256xf32>
    %95 = arith.mulf %91, %94 : vector<8x256xf32>
    %c5_57 = arith.constant 5 : index
    %c0_58 = arith.constant 0 : index
    %c0_59 = arith.constant 0 : index
    %96 = vector.load %arg13[%c5_57, %c0_58, %c0_59] : memref<9x8x1xf32, #tpu.memory_space<vmem>>, vector<1x8x1xf32>
    %97 = vector.shape_cast %96 : vector<1x8x1xf32> to vector<8x1xf32>
    %98 = vector.broadcast %97 : vector<8x1xf32> to vector<8x256xf32>
    %99 = arith.mulf %95, %98 : vector<8x256xf32>
    %100 = arith.addf %90, %99 : vector<8x256xf32>
    %c241_i32 = arith.constant 241 : i32
    %101 = tpu.dynamic_rotate %46 by %c241_i32 dim 1 : vector<8x256xf32>, i32 -> vector<8x256xf32>
    %c6 = arith.constant 6 : index
    %c0_60 = arith.constant 0 : index
    %c0_61 = arith.constant 0 : index
    %102 = vector.load %arg4[%c6, %c0_60, %c0_61] : memref<9x1x256xf32, #tpu.memory_space<vmem>>, vector<1x1x256xf32>
    %103 = vector.shape_cast %102 : vector<1x1x256xf32> to vector<1x256xf32>
    %104 = vector.broadcast %103 : vector<1x256xf32> to vector<8x256xf32>
    %105 = arith.mulf %101, %104 : vector<8x256xf32>
    %c6_62 = arith.constant 6 : index
    %c0_63 = arith.constant 0 : index
    %c0_64 = arith.constant 0 : index
    %106 = vector.load %arg13[%c6_62, %c0_63, %c0_64] : memref<9x8x1xf32, #tpu.memory_space<vmem>>, vector<1x8x1xf32>
    %107 = vector.shape_cast %106 : vector<1x8x1xf32> to vector<8x1xf32>
    %108 = vector.broadcast %107 : vector<8x1xf32> to vector<8x256xf32>
    %109 = arith.mulf %105, %108 : vector<8x256xf32>
    %110 = arith.addf %100, %109 : vector<8x256xf32>
    %c240_i32 = arith.constant 240 : i32
    %111 = tpu.dynamic_rotate %46 by %c240_i32 dim 1 : vector<8x256xf32>, i32 -> vector<8x256xf32>
    %c7 = arith.constant 7 : index
    %c0_65 = arith.constant 0 : index
    %c0_66 = arith.constant 0 : index
    %112 = vector.load %arg4[%c7, %c0_65, %c0_66] : memref<9x1x256xf32, #tpu.memory_space<vmem>>, vector<1x1x256xf32>
    %113 = vector.shape_cast %112 : vector<1x1x256xf32> to vector<1x256xf32>
    %114 = vector.broadcast %113 : vector<1x256xf32> to vector<8x256xf32>
    %115 = arith.mulf %111, %114 : vector<8x256xf32>
    %c7_67 = arith.constant 7 : index
    %c0_68 = arith.constant 0 : index
    %c0_69 = arith.constant 0 : index
    %116 = vector.load %arg13[%c7_67, %c0_68, %c0_69] : memref<9x8x1xf32, #tpu.memory_space<vmem>>, vector<1x8x1xf32>
    %117 = vector.shape_cast %116 : vector<1x8x1xf32> to vector<8x1xf32>
    %118 = vector.broadcast %117 : vector<8x1xf32> to vector<8x256xf32>
    %119 = arith.mulf %115, %118 : vector<8x256xf32>
    %120 = arith.addf %110, %119 : vector<8x256xf32>
    %c239_i32 = arith.constant 239 : i32
    %121 = tpu.dynamic_rotate %46 by %c239_i32 dim 1 : vector<8x256xf32>, i32 -> vector<8x256xf32>
    %c8 = arith.constant 8 : index
    %c0_70 = arith.constant 0 : index
    %c0_71 = arith.constant 0 : index
    %122 = vector.load %arg4[%c8, %c0_70, %c0_71] : memref<9x1x256xf32, #tpu.memory_space<vmem>>, vector<1x1x256xf32>
    %123 = vector.shape_cast %122 : vector<1x1x256xf32> to vector<1x256xf32>
    %124 = vector.broadcast %123 : vector<1x256xf32> to vector<8x256xf32>
    %125 = arith.mulf %121, %124 : vector<8x256xf32>
    %c8_72 = arith.constant 8 : index
    %c0_73 = arith.constant 0 : index
    %c0_74 = arith.constant 0 : index
    %126 = vector.load %arg13[%c8_72, %c0_73, %c0_74] : memref<9x8x1xf32, #tpu.memory_space<vmem>>, vector<1x8x1xf32>
    %127 = vector.shape_cast %126 : vector<1x8x1xf32> to vector<8x1xf32>
    %128 = vector.broadcast %127 : vector<8x1xf32> to vector<8x256xf32>
    %129 = arith.mulf %125, %128 : vector<8x256xf32>
    %130 = arith.addf %120, %129 : vector<8x256xf32>
    %c0_75 = arith.constant 0 : index
    %c0_76 = arith.constant 0 : index
    %131 = vector.load %arg14[%c0_75, %c0_76] : memref<8x1xf32, #tpu.memory_space<vmem>>, vector<8x1xf32>
    %132 = vector.broadcast %131 : vector<8x1xf32> to vector<8x256xf32>
    %133 = arith.addf %130, %132 : vector<8x256xf32>
    %cst_77 = arith.constant 0.000000e+00 : f32
    %134 = vector.broadcast %cst_77 : f32 to vector<8x256xf32>
    %135 = arith.maximumf %133, %134 : vector<8x256xf32>
    %136 = arith.addf %46, %135 : vector<8x256xf32>
    %c0_78 = arith.constant 0 : index
    %c0_79 = arith.constant 0 : index
    %c0_80 = arith.constant 0 : index
    %137 = vector.load %arg15[%c0_78, %c0_79, %c0_80] : memref<1x8x256xf32, #tpu.memory_space<vmem>>, vector<1x8x256xf32>
    %138 = vector.shape_cast %137 : vector<1x8x256xf32> to vector<8x256xf32>
    %139 = vector.shape_cast %136 : vector<8x256xf32> to vector<1x8x256xf32>
    tpu.vector_store %arg15[%c0_78, %c0_79, %c0_80], %139 {strides = array<i32>} : memref<1x8x256xf32, #tpu.memory_space<vmem>>, vector<1x8x256xf32>,
    return
  }
  func.func @transform_0(%arg0: i32) -> (i32, i32, i32) {
    %c0_i32 = arith.constant 0 : i32
    %c0_i32_0 = arith.constant 0 : i32
    %c0_i32_1 = arith.constant 0 : i32
    return %arg0, %c0_i32, %c0_i32_0 : i32, i32, i32
  }
  func.func @transform_1(%arg0: i32) -> (i32, i32, i32) {
    %c0_i32 = arith.constant 0 : i32
    %c0_i32_0 = arith.constant 0 : i32
    %c0_i32_1 = arith.constant 0 : i32
    return %arg0, %c0_i32, %c0_i32_0 : i32, i32, i32
  }
  func.func @transform_2(%arg0: i32) -> (i32, i32) {
    %c0_i32 = arith.constant 0 : i32
    %c0_i32_0 = arith.constant 0 : i32
    %c0_i32_1 = arith.constant 0 : i32
    return %c0_i32, %c0_i32_0 : i32, i32
  }
  func.func @transform_3(%arg0: i32) -> (i32, i32, i32) {
    %c0_i32 = arith.constant 0 : i32
    %c0_i32_0 = arith.constant 0 : i32
    %c0_i32_1 = arith.constant 0 : i32
    %c0_i32_2 = arith.constant 0 : i32
    return %c0_i32, %c0_i32_0, %c0_i32_1 : i32, i32, i32
  }
  func.func @transform_4(%arg0: i32) -> (i32, i32) {
    %c0_i32 = arith.constant 0 : i32
    %c0_i32_0 = arith.constant 0 : i32
    %c0_i32_1 = arith.constant 0 : i32
    return %c0_i32, %c0_i32_0 : i32, i32
  }
  func.func @transform_5(%arg0: i32) -> (i32, i32) {
    %c0_i32 = arith.constant 0 : i32
    %c0_i32_0 = arith.constant 0 : i32
    %c0_i32_1 = arith.constant 0 : i32
    return %c0_i32, %c0_i32_0 : i32, i32
  }
  func.func @transform_6(%arg0: i32) -> (i32, i32) {
    %c0_i32 = arith.constant 0 : i32
    %c0_i32_0 = arith.constant 0 : i32
    %c0_i32_1 = arith.constant 0 : i32
    return %c0_i32, %c0_i32_0 : i32, i32
  }
  func.func @transform_7(%arg0: i32) -> (i32, i32) {
    %c0_i32 = arith.constant 0 : i32
    %c0_i32_0 = arith.constant 0 : i32
    %c0_i32_1 = arith.constant 0 : i32
    return %c0_i32, %c0_i32_0 : i32, i32
  }
  func.func @transform_8(%arg0: i32) -> (i32, i32) {
    %c0_i32 = arith.constant 0 : i32
    %c0_i32_0 = arith.constant 0 : i32
    %c0_i32_1 = arith.constant 0 : i32
    return %c0_i32, %c0_i32_0 : i32, i32
  }
  func.func @transform_9(%arg0: i32) -> (i32, i32) {
    %c0_i32 = arith.constant 0 : i32
    %c0_i32_0 = arith.constant 0 : i32
    %c0_i32_1 = arith.constant 0 : i32
    return %c0_i32, %c0_i32_0 : i32, i32
  }
  func.func @transform_10(%arg0: i32) -> (i32, i32) {
    %c0_i32 = arith.constant 0 : i32
    %c0_i32_0 = arith.constant 0 : i32
    %c0_i32_1 = arith.constant 0 : i32
    return %c0_i32, %c0_i32_0 : i32, i32
  }
  func.func @transform_11(%arg0: i32) -> (i32, i32) {
    %c0_i32 = arith.constant 0 : i32
    %c0_i32_0 = arith.constant 0 : i32
    %c0_i32_1 = arith.constant 0 : i32
    return %c0_i32, %c0_i32_0 : i32, i32
  }
  func.func @transform_12(%arg0: i32) -> (i32, i32, i32) {
    %c0_i32 = arith.constant 0 : i32
    %c0_i32_0 = arith.constant 0 : i32
    %c0_i32_1 = arith.constant 0 : i32
    %c0_i32_2 = arith.constant 0 : i32
    return %c0_i32, %c0_i32_0, %c0_i32_1 : i32, i32, i32
  }
  func.func @transform_13(%arg0: i32) -> (i32, i32) {
    %c0_i32 = arith.constant 0 : i32
    %c0_i32_0 = arith.constant 0 : i32
    %c0_i32_1 = arith.constant 0 : i32
    return %c0_i32, %c0_i32_0 : i32, i32
  }
  func.func @transform_14(%arg0: i32) -> (i32, i32, i32) {
    %c0_i32 = arith.constant 0 : i32
    %c0_i32_0 = arith.constant 0 : i32
    %c0_i32_1 = arith.constant 0 : i32
    return %arg0, %c0_i32, %c0_i32_0 : i32, i32, i32
  }
}

</mosaic_0001>

<bundles_post_ra>
// kernel: selfie_final_block.1
= control target key start
LH: loop header
LB: loop body
LE: loop exit
PB: predicated region body
PF: predicated region fallthrough
CT: control target
= control target key end

     0   :  { %s1319_s29 = smov 0   ;;  %s1613_s0 = inlined_call_operand.vmem [shape: f32[2,4,64], index: 0, kind: input, shape index: {}]   ;;  %s1614_s1 = inlined_call_operand.vmem [shape: f32[2,8,256], index: 1, kind: input, shape index: {}]   ;;  %s1615_s2 = inlined_call_operand.vmem [shape: f32[64,256], index: 2, kind: input, shape index: {}]   ;;  %s1616_s3 = inlined_call_operand.vmem [shape: f32[9,1,256], index: 3, kind: input, shape index: {}]   ;;  %s1617_s4 = inlined_call_operand.vmem [shape: f32[8,4], index: 4, kind: input, shape index: {}]   ;;  %s1618_s5 = inlined_call_operand.vmem [shape: f32[8,1], index: 5, kind: input, shape index: {}]   ;;  %s1619_s6 = inlined_call_operand.vmem [shape: f32[8,8], index: 6, kind: input, shape index: {}]   ;;  %s1620_s7 = inlined_call_operand.vmem [shape: f32[1,8], index: 7, kind: input, shape index: {}]   ;;  %s1621_s8 = inlined_call_operand.vmem [shape: f32[8,8], index: 8, kind: input, shape index: {}]   ;;  %s1622_s9 = inlined_call_operand.vmem [shape: f32[8,1], index: 9, kind: input, shape index: {}]   ;;  %s1623_s10 = inlined_call_operand.vmem [shape: f32[8,8], index: 10, kind: input, shape index: {}]   ;;  %s1624_s11 = inlined_call_operand.vmem [shape: f32[8,1], index: 11, kind: input, shape index: {}]   ;;  %s1625_s12 = inlined_call_operand.vmem [shape: f32[9,8,1], index: 12, kind: input, shape index: {}]   ;;  %s1626_s13 = inlined_call_operand.vmem [shape: f32[8,1], index: 13, kind: input, shape index: {}]   ;;  %s1627_s14 = inlined_call_operand.vmem [shape: f32[2,8,256], index: 14, kind: output, shape index: {}]  }
   0x1 LB: > { %s1151_s30 = sadd.s32 4294967295, %s1232_s29   ;;  %p1155_p0 = scmp.ge.s32.totalorder %s1232_s29, 1  ;;  %s1232_s29 = sphi %s1319_s29, %s24_s29  }
   0x2   : > { %p421_p1 = scmp.lt.s32.totalorder %s1232_s29, 3 }
   0x4   : > { %p422_p2 = pnand %p1155_p0, %p421_p1 }
   0x5   : > { %v489_v0 = vld [vmem:[%s1615_s2 + $0x8] sm:$0xff] (!%p422_p2)  ;;  %v491_v1 = vld [vmem:[%s1615_s2 + $0x18] sm:$0xff] (!%p422_p2)  ;;  %v488_v2 = vld [vmem:[%s1615_s2] sm:$0xff] (!%p422_p2)  ;;  %v1234_v7 = vmov (!%p422_p2), 0.0   ;;  %p471_p3 = scmp.lt.s32.totalorder (!%p422_p2), %s1151_s30, 1  ;;  %vm504_vm0 = vcmask (!%p422_p2), 523264   ;;  %v689_v51 = vlaneseq (!%p422_p2) }
   0x6   : > { %425 = sbr.rel (%p422_p2) target bundleno = 1309 (0x51d), region = 76  ;;  %v1186_v3 = vpack.c.bf16 (!%p422_p2), %v491_v1, %v489_v0  ;;  %v490_v4 = vld [vmem:[%s1615_s2 + $0x10] sm:$0xff] (!%p422_p2)  ;;  %v493_v5 = vld [vmem:[%s1615_s2 + $0x28] sm:$0xff] (!%p422_p2)  ;;  %v495_v6 = vld [vmem:[%s1615_s2 + $0x38] sm:$0xff] (!%p422_p2)  ;;  %572 = vmatprep.mubr.f32.mxu0 (!%p422_p2), %v1234_v7  ;;  %661 = vmatprep.mubr.f32.mxu1 (!%p422_p2), %v1234_v7  ;;  %v1235_v27 = vmov (!%p422_p2), 0   ;;  %vm590_vm1 = vcmask (!%p422_p2), 1043456  }
   0x7   : > { %v1188_v8 = vpack.c.bf16 (!%p422_p2), %v490_v4, %v488_v2  ;;  %v1190_v9 = vpack.c.bf16 (!%p422_p2), %v495_v6, %v493_v5  ;;  %v492_v10 = vld [vmem:[%s1615_s2 + $0x20] sm:$0xff] (!%p422_p2)  ;;  %v494_v11 = vld [vmem:[%s1615_s2 + $0x30] sm:$0xff] (!%p422_p2)  ;;  %v497_v12 = vld [vmem:[%s1615_s2 + $0x48] sm:$0xff] (!%p422_p2)  ;;  %1220 = vset.pattern.permute.xlu0 (!%p422_p2), %v1235_v27  ;;  %1221 = vset.pattern.permute.xlu1 (!%p422_p2), %v1235_v27  ;;  %vm586_vm2 = vcmask (!%p422_p2), 31744   ;;  %vm677_vm3 = vcmask (!%p422_p2), 64512   ;;  %s1236_s21 = smov (!%p422_p2), 16  }
   0x8   : > { %1187 = vmatprep.subr.bf16.mxu0 (!%p422_p2), %v1186_v3  ;;  %v499_v13 = vld [vmem:[%s1615_s2 + $0x58] sm:$0xff] (!%p422_p2)  ;;  %v1192_v14 = vpack.c.bf16 (!%p422_p2), %v494_v11, %v492_v10  ;;  %v496_v16 = vld [vmem:[%s1615_s2 + $0x40] sm:$0xff] (!%p422_p2)  ;;  %v498_v17 = vld [vmem:[%s1615_s2 + $0x50] sm:$0xff] (!%p422_p2)  ;;  %v1414_v54 = vshrl.u32 (!%p422_p2), %v689_v51, 7  ;;  %s1238_s23 = smov (!%p422_p2), 15   ;;  %s1239_s24 = smov (!%p422_p2), 1  }
   0x9   : > { %1189 = vmatpush1.bf16.msra.mxu0 (!%p422_p2), %v1188_v8  ;;  %v1194_v15 = vpack.c.bf16 (!%p422_p2), %v499_v13, %v497_v12  ;;  %v501_v18 = vld [vmem:[%s1615_s2 + $0x68] sm:$0xff] (!%p422_p2)  ;;  %v503_v19 = vld [vmem:[%s1615_s2 + $0x78] sm:$0xff] (!%p422_p2)  ;;  %v1196_v20 = vpack.c.bf16 (!%p422_p2), %v498_v17, %v496_v16  ;;  %v500_v22 = vld [vmem:[%s1615_s2 + $0x60] sm:$0xff] (!%p422_p2)  ;;  %s1240_s25 = smov (!%p422_p2), 113   ;;  %s1241_s26 = smov (!%p422_p2), 127  }
   0xa   : > { %1191 = vmatprep.subr.bf16.mxu0 (!%p422_p2), %v1190_v9  ;;  %v1198_v21 = vpack.c.bf16 (!%p422_p2), %v503_v19, %v501_v18  ;;  %v502_v23 = vld [vmem:[%s1615_s2 + $0x70] sm:$0xff] (!%p422_p2)  ;;  %v580_v26 = vld [vmem:[%s1618_s5] sm:$0xff] (!%p422_p2)  ;;  %v1175_v41 = vld [vmem:[%s1625_s12 + $0x28] sm:$0xff] (!%p422_p2)  ;;  %v1420_v58 = vsub.s32 (!%p422_p2), 0, %v1414_v54  ;;  %s1242_s28 = smov (!%p422_p2), 112   ;;  %s1243_s15 = smov (!%p422_p2), 111  }
   0xb   : > { %v1200_v24 = vpack.c.bf16 (!%p422_p2), %v502_v23, %v500_v22  ;;  %583 = vperm.xlu0 (!%p422_p2), %1220, %v580_v26   ;;  %v579_v30 = vld [vmem:[%s1617_s4] sm:$0xff] (!%p422_p2)  ;;  %v1179_v42 = vld [vmem:[%s1625_s12 + $0x38] sm:$0xff] (!%p422_p2)  ;;  %v1168_v9 = vld [vmem:[%s1625_s12 + $0x8] sm:$0xff] (!%p422_p2) }
   0xc   : > { %v675_v43 = vld [vmem:[%s1619_s6] sm:$0xff] (!%p422_p2)  ;;  %v1170_v10 = vld [vmem:[%s1625_s12 + $0x10] sm:$0xff] (!%p422_p2)  ;;  %v1172_v11 = vld [vmem:[%s1625_s12 + $0x18] sm:$0xff] (!%p422_p2) }
   0xd   : > { %s1629_s30 = smov (!%p471_p3, %s1151_s30), 1  ;;  %1193 = vmatpush1.bf16.msra.mxu0 %v1192_v14  ;;  %v685_v55 = vld [vmem:[%s1620_s7] sm:$0x1]  ;;  %v1177_v13 = vld [vmem:[%s1625_s12 + $0x30] sm:$0xff] }
   0xe   : > { %1195 = vmatprep.subr.bf16.mxu0 %v1194_v15  ;;  %s1156_s19 = sshll.u32 %s1629_s30, 2  ;;  %s1184_s27 = sshll.u32 %s1629_s30, 4  ;;  %v688_v60 = vld [vmem:[%s1621_s8] sm:$0xff] }
   0xf   : > { %s474_s22 = scalar_lea.vmem %s1613_s0, %s1156_s19  ;;  %s479_s16 = scalar_lea.vmem %s1614_s1, %s1184_s27  ;;  %v697_v0 = vld [vmem:[%s1622_s9] sm:$0xff] }
  0x10   : > { %v485_v25 = vld [vmem:[%s474_s22] sm:$0xf]  ;;  %v487_v35 = vld [vmem:[%s479_s16 + $0x8] sm:$0xff]  ;;  %s1237_s22 = smov 17  }
  0x11   : > { %1197 = vmatpush1.bf16.msra.mxu0 %v1196_v20  ;;  %v1397_v32 = vld [vmem:[%s479_s16] sm:$0xff] }
  0x12   : > { %1199 = vmatprep.subr.bf16.mxu0 %v1198_v21  ;;  %v820_v8 = vld [vmem:[%s1625_s12] sm:$0xff] }
  0x13   : > { %v1173_v12 = vld [vmem:[%s1625_s12 + $0x20] sm:$0xff] }
  0x14   : > { %v1181_v14 = vld [vmem:[%s1625_s12 + $0x40] sm:$0xff] }
  0x15   : > { %1201 = vmatpush1.bf16.msra.mxu0 %v1200_v24  ;;  %v714_v20 = vld [vmem:[%s1623_s10] sm:$0xff] }
  0x18   : > { %1161 = vmatmul.mubr.msk.f32.vlgmr.msra.gmra.mrb[0].mxu0 %vm504_vm0, %v485_v25 }
  0x8a   : > { %v584_v31 = vpop.permute.xlu0 %583 }
  0xeb   : > { %v574_v28 = vpop.f32.mrb[0].mxu0 }
  0xec   : > { %v576_v29 = vpop.f32.mrb[1].mxu0 }
  0xed   : > { %1162 = vmatprep.subr.msk.mxu1 %vm590_vm1, %v576_v29 }
  0xee   : > { %1163 = vmatpush1.msk.msra.mxu1 %vm590_vm1, %v574_v28  ;;  %v1070_v28 = vld [vmem:[%s1626_s13] sm:$0xff] }
  0xef   : > { %1164 = vmatmul.mubr.msk.f32.vlgmr.msra.gmra.mrb[0].mxu1 %vm586_vm2, %v579_v30 }
  0xf0   : > { %788 = vmatprep.mubr.f32.mxu1 %v1234_v7  ;;  %v715_v7 = vld [vmem:[%s1624_s11] sm:$0xff] }
 0x1c2   : > { %v663_v33 = vpop.f32.mrb[0].mxu1 }
 0x1c3   : > { %v1399_v34 = vadd.f32 %v663_v33, %v584_v31  ;;  %v665_v36 = vpop.f32.mrb[1].mxu1 }
 0x1c4   : > { %v666_v37 = vadd.f32 %v665_v36, %v584_v31 }
 0x1c5   : > { %v668_v38 = vadd.f32 %v1399_v34, %v1397_v32 }
 0x1c6   : > { %v669_v39 = vadd.f32 %v666_v37, %v487_v35 }
 0x1c8   : > { %v670_v40 = vadd.f32 %v669_v39, %v668_v38 }
 0x1ca   : > { %671 = vadd.xlane.f32.xlu0 %v670_v40 }
 0x1e0   : > { %964 = vperm.xlu0 %1220, %v1175_v41  }
 0x1e4   : > { %1030 = vperm.xlu0 %1220, %v1179_v42   ;;  %v1496_v42 = vand.u32 127, %v689_v51 }
 0x1e6   : > { %vm803_vm4 = vcmp.lt.s32.totalorder %v1496_v42, 17  ;;  %vm832_vm5 = vcmp.lt.s32.totalorder %v1496_v42, 16  ;;  %vm865_vm6 = vcmp.lt.s32.totalorder %v1496_v42, 15  ;;  %vm898_vm7 = vcmp.lt.s32.totalorder %v1496_v42, 1 }
 0x1e7   : > { %vm942_vm8 = vcmp.lt.s32.totalorder %v1496_v42, 127  ;;  %vm975_vm9 = vcmp.lt.s32.totalorder %v1496_v42, 113  ;;  %vm1008_vm10 = vcmp.lt.s32.totalorder %v1496_v42, 112  ;;  %vm1041_vm11 = vcmp.lt.s32.totalorder %v1496_v42, 111 }
 0x257   : > { %v672_v44 = vpop.xlane.xlu0 %671 }
 0x258   : > { %v674_v45 = vmul.f32 0.00390625, %v672_v44 }
 0x25a   : > { %v676_v46 = vmul.f32 %v675_v43, %v674_v45  ;;  %v1503_v45 = vsub.s32 1, %v1414_v54 }
 0x25c   : > { %v678_v47 = vsel %vm677_vm3, %v676_v46, 0.0  ;;  %v806_v46 = vld [vmem:[%s1616_s3] sm:$0x3] }
 0x25d   : > { %v679_v48 = vrot.slane %v678_v47, 4 }
 0x25f   : > { %v680_v49 = vadd.f32 %v679_v48, %v678_v47  ;;  %v1167_v47 = vld [vmem:[%s1616_s3 + $0x2] sm:$0x3]  ;;  %v1169_v48 = vld [vmem:[%s1616_s3 + $0x4] sm:$0x3] }
 0x261   : > { %v681_v50 = vrot.slane %v680_v49, 2 }
 0x263   : > { %v682_v52 = vadd.f32 %v681_v50, %v680_v49  ;;  %v811_v49 = vrot.slane %v806_v46, %v1420_v58  ;;  %v815_v50 = vrot.slane %v806_v46, %v1503_v45 }
 0x265   : > { %v683_v53 = vrot.slane %v682_v52, 1 }
 0x267   : > { %v684_v56 = vadd.f32 %v683_v53, %v682_v52  ;;  %v1171_v53 = vld [vmem:[%s1616_s3 + $0x6] sm:$0x3] }
 0x269   : > { %v686_v57 = vadd.f32 %v685_v55, %v684_v56  ;;  %v841_v56 = vrot.slane %v1167_v47, %v1420_v58 }
 0x26b   : > { %v687_v59 = vmax.f32 %v686_v57, 0.0  ;;  %v845_v57 = vrot.slane %v1167_v47, %v1503_v45 }
 0x26d   : > { %v692_v61 = vrot.slane %v687_v59, %v1420_v58  ;;  %v874_v59 = vrot.slane %v1169_v48, %v1420_v58 }
 0x26f   : > { %v693_v62 = vmul.f32 %v692_v61, %v688_v60  ;;  %v878_v60 = vrot.slane %v1169_v48, %v1503_v45  ;;  %v907_v61 = vrot.slane %v1171_v53, %v1420_v58 }
 0x271   : > { %v694_v63 = vsel %vm677_vm3, %v693_v62, 0.0 }
 0x272   : > { %695 = vadd.xlane.f32.xlu1 %v694_v63 }
 0x2ff   : > { %v696_v1 = vpop.xlane.xlu1 %695 }
 0x300   : > { %v698_v2 = vadd.f32 %v697_v0, %v696_v1 }
 0x302   : > { %v1165_v3 = vmul.f32 -1.442695, %v698_v2 }
 0x304   : > { %1222 = vpow2.f32 %v1165_v3 }
 0x30e   : > { %v1223_v4 = vpop.eup %1222 }
 0x30f   : > { %v702_v5 = vadd.f32 1.0, %v1223_v4  ;;  %v911_v4 = vrot.slane %v1171_v53, %v1503_v45 }
 0x311   : > { %1224 = vrcp.f32 %v702_v5  ;;  %v1174_v5 = vld [vmem:[%s1616_s3 + $0xa] sm:$0x3] }
 0x31b   : > { %v1225_v6 = vpop.eup %1224 }
 0x31c   : > { %707 = vperm.xlu1 %1221, %v1225_v6   ;;  %v1176_v6 = vld [vmem:[%s1616_s3 + $0xc] sm:$0x3] }
 0x31d   : > { %v988_v46 = vrot.slane %v1176_v6, %v1503_v45 }
 0x320   : > { %718 = vperm.xlu1 %1221, %v715_v7  }
 0x324   : > { %823 = vperm.xlu1 %1221, %v820_v8  }
 0x328   : > { %854 = vperm.xlu1 %1221, %v1168_v9  }
 0x32c   : > { %887 = vperm.xlu1 %1221, %v1170_v10  }
 0x330   : > { %920 = vperm.xlu1 %1221, %v1172_v11  }
 0x334   : > { %931 = vperm.xlu1 %1221, %v1173_v12  }
 0x338   : > { %997 = vperm.xlu1 %1221, %v1177_v13  }
 0x33c   : > { %1063 = vperm.xlu1 %1221, %v1181_v14  }
 0x39b   : > { %v708_v15 = vpop.permute.xlu1 %707 }
 0x39c   : > { %v710_v16 = vmul.f32 %v708_v15, %v1397_v32  ;;  %v711_v17 = vmul.f32 %v708_v15, %v487_v35  ;;  %v951_v15 = vrot.slane %v1174_v5, %v1420_v58 }
 0x39e   : > { %v712_v18 = vadd.f32 %v710_v16, %v1399_v34  ;;  %v713_v19 = vadd.f32 %v711_v17, %v666_v37  ;;  %v1487_v34 = vpop.permute.xlu0 %964  ;;  %v955_v16 = vrot.slane %v1174_v5, %v1503_v45  ;;  %v984_v17 = vrot.slane %v1176_v6, %v1420_v58 }
 0x39f   : > { %v719_v21 = vpop.permute.xlu1 %718 }
 0x3a0   : > { %724 = vmatprep.subr.mxu1 %v713_v19 }
 0x3a1   : > { %725 = vmatpush1.msra.mxu1 %v712_v18 }
 0x3a2   : > { %1166 = vmatmul.mubr.msk.f32.vlgmr.msra.gmra.mrb[2].mxu1 %vm677_vm3, %v714_v20  ;;  %v1491_v36 = vpop.permute.xlu0 %1030 }
 0x3a3   : > { %v824_v29 = vpop.permute.xlu1 %823 }
 0x3a7   : > { %v855_v30 = vpop.permute.xlu1 %854 }
 0x3ab   : > { %v1483_v31 = vpop.permute.xlu1 %887 }
 0x3af   : > { %v1485_v32 = vpop.permute.xlu1 %920 }
 0x3b3   : > { %v932_v33 = vpop.permute.xlu1 %931 }
 0x3b7   : > { %v1489_v35 = vpop.permute.xlu1 %997 }
 0x3bb   : > { %v1493_v37 = vpop.permute.xlu1 %1063 }
 0x475   : > { %v790_v22 = vpop.f32.mrb[2].mxu1 }
 0x476   : > { %v791_v23 = vadd.f32 %v790_v22, %v719_v21  ;;  %v792_v24 = vpop.f32.mrb[3].mxu1 }
 0x477   : > { %v793_v26 = vadd.f32 %v792_v24, %v719_v21  ;;  %v1178_v24 = vld [vmem:[%s1616_s3 + $0xe] sm:$0x3] }
 0x478   : > { %v1460_v25 = vmax.f32 %v791_v23, 0.0  ;;  %v1017_v47 = vrot.slane %v1178_v24, %v1420_v58  ;;  %v1021_v48 = vrot.slane %v1178_v24, %v1503_v45 }
 0x479   : > { %v1468_v27 = vmax.f32 %v793_v26, 0.0 }
 0x47a   : > { %828 = vrot.lane.b32.xlu1 %v1460_v25, %s1236_s21  ;;  %797 = vrot.lane.b32.xlu0 %v1460_v25, %s1237_s22  ;;  %v934_v62 = vmul.f32 %v932_v33, %v1460_v25 }
 0x47b   : > { %v935_v63 = vmul.f32 %v932_v33, %v1468_v27 }
 0x47e   : > { %861 = vrot.lane.b32.xlu1 %v1460_v25, %s1238_s23  ;;  %894 = vrot.lane.b32.xlu0 %v1460_v25, %s1239_s24 }
 0x482   : > { %971 = vrot.lane.b32.xlu1 %v1460_v25, %s1240_s25  ;;  %938 = vrot.lane.b32.xlu0 %v1460_v25, %s1241_s26 }
 0x486   : > { %799 = vrot.lane.b32.xlu1 %v1468_v27, %s1237_s22  ;;  %1004 = vrot.lane.b32.xlu0 %v1460_v25, %s1242_s28 }
 0x48a   : > { %830 = vrot.lane.b32.xlu1 %v1468_v27, %s1236_s21  ;;  %863 = vrot.lane.b32.xlu0 %v1468_v27, %s1238_s23  ;;  %s484_s23 = scalar_lea.vmem %s1627_s14, %s1184_s27 }
 0x48e   : > { %896 = vrot.lane.b32.xlu1 %v1468_v27, %s1239_s24  ;;  %1037 = vrot.lane.b32.xlu0 %v1460_v25, %s1243_s15 }
 0x492   : > { %940 = vrot.lane.b32.xlu1 %v1468_v27, %s1241_s26  ;;  %973 = vrot.lane.b32.xlu0 %v1468_v27, %s1240_s25 }
 0x496   : > { %1006 = vrot.lane.b32.xlu1 %v1468_v27, %s1242_s28  ;;  %1073 = vperm.xlu0 %1220, %v1070_v28  }
 0x49a   : > { %1039 = vrot.lane.b32.xlu1 %v1468_v27, %s1243_s15 }
 0x4ec   : > { %v829_v38 = vpop.permute.xlu1 %828  ;;  %v798_v39 = vpop.permute.xlu0 %797 }
 0x4f0   : > { %v862_v40 = vpop.permute.xlu1 %861  ;;  %v895_v41 = vpop.permute.xlu0 %894 }
 0x4f4   : > { %v1498_v43 = vpop.permute.xlu1 %971  ;;  %v1500_v44 = vpop.permute.xlu0 %938 }
 0x4f8   : > { %v800_v51 = vpop.permute.xlu1 %799  ;;  %v1517_v52 = vpop.permute.xlu0 %1004 }
 0x4f9   : > { %v804_v54 = vsel %vm803_vm4, %v798_v39, %v800_v51  ;;  %v805_v55 = vsel %vm803_vm4, %v800_v51, %v798_v39 }
 0x4fa   : > { %v818_v0 = vmul.f32 %v811_v49, %v805_v55  ;;  %v819_v1 = vmul.f32 %v815_v50, %v804_v54 }
 0x4fc   : > { %v831_v2 = vpop.permute.xlu1 %830  ;;  %v864_v3 = vpop.permute.xlu0 %863  ;;  %v826_v18 = vmul.f32 %v824_v29, %v818_v0  ;;  %v827_v19 = vmul.f32 %v824_v29, %v819_v1  ;;  %v1180_v0 = vld [vmem:[%s1616_s3 + $0x10] sm:$0x3] }
 0x4fd   : > { %v833_v7 = vsel %vm832_vm5, %v829_v38, %v831_v2  ;;  %v834_v8 = vsel %vm832_vm5, %v831_v2, %v829_v38  ;;  %v866_v9 = vsel %vm865_vm6, %v862_v40, %v864_v3  ;;  %v867_v10 = vsel %vm865_vm6, %v864_v3, %v862_v40 }
 0x4fe   : > { %v848_v11 = vmul.f32 %v841_v56, %v834_v8  ;;  %v849_v12 = vmul.f32 %v845_v57, %v833_v7  ;;  %v881_v13 = vmul.f32 %v874_v59, %v867_v10  ;;  %v882_v14 = vmul.f32 %v878_v60, %v866_v9 }
 0x4ff   : > { %v1050_v8 = vrot.slane %v1180_v0, %v1420_v58  ;;  %v1054_v9 = vrot.slane %v1180_v0, %v1503_v45 }
 0x500   : > { %v857_v20 = vmul.f32 %v855_v30, %v848_v11  ;;  %v858_v21 = vmul.f32 %v855_v30, %v849_v12  ;;  %v897_v22 = vpop.permute.xlu1 %896  ;;  %v1038_v23 = vpop.permute.xlu0 %1037  ;;  %v890_v26 = vmul.f32 %v1483_v31, %v881_v13  ;;  %v891_v28 = vmul.f32 %v1483_v31, %v882_v14 }
 0x501   : > { %v899_v33 = vsel %vm898_vm7, %v895_v41, %v897_v22  ;;  %v900_v38 = vsel %vm898_vm7, %v897_v22, %v895_v41 }
 0x502   : > { %v859_v39 = vadd.f32 %v857_v20, %v826_v18  ;;  %v860_v29 = vadd.f32 %v858_v21, %v827_v19  ;;  %v914_v40 = vmul.f32 %v907_v61, %v900_v38  ;;  %v915_v30 = vmul.f32 %v911_v4, %v899_v33 }
 0x504   : > { %v892_v49 = vadd.f32 %v890_v26, %v859_v39  ;;  %v893_v31 = vadd.f32 %v891_v28, %v860_v29  ;;  %v923_v50 = vmul.f32 %v1485_v32, %v914_v40  ;;  %v924_v51 = vmul.f32 %v1485_v32, %v915_v30  ;;  %v941_v53 = vpop.permute.xlu1 %940  ;;  %v974_v41 = vpop.permute.xlu0 %973 }
 0x505   : > { %v943_v54 = vsel %vm942_vm8, %v1500_v44, %v941_v53  ;;  %v944_v55 = vsel %vm942_vm8, %v941_v53, %v1500_v44  ;;  %v976_v56 = vsel %vm975_vm9, %v1498_v43, %v974_v41  ;;  %v977_v57 = vsel %vm975_vm9, %v974_v41, %v1498_v43 }
 0x506   : > { %v925_v59 = vadd.f32 %v923_v50, %v892_v49  ;;  %v926_v32 = vadd.f32 %v924_v51, %v893_v31  ;;  %v958_v60 = vmul.f32 %v951_v15, %v943_v54  ;;  %v959_v61 = vmul.f32 %v955_v16, %v944_v55 }
 0x507   : > { %v991_v1 = vmul.f32 %v984_v17, %v976_v56  ;;  %v992_v2 = vmul.f32 %v988_v46, %v977_v57 }
 0x508   : > { %v936_v44 = vadd.f32 %v934_v62, %v925_v59  ;;  %v937_v3 = vadd.f32 %v935_v63, %v926_v32  ;;  %v967_v4 = vmul.f32 %v1487_v34, %v958_v60  ;;  %v968_v5 = vmul.f32 %v1487_v34, %v959_v61  ;;  %v1007_v6 = vpop.permute.xlu1 %1006 }
 0x509   : > { %v1009_v43 = vsel %vm1008_vm10, %v1517_v52, %v1007_v6  ;;  %v1010_v7 = vsel %vm1008_vm10, %v1007_v6, %v1517_v52  ;;  %v1000_v12 = vmul.f32 %v1489_v35, %v991_v1  ;;  %v1001_v34 = vmul.f32 %v1489_v35, %v992_v2 }
 0x50a   : > { %v969_v10 = vadd.f32 %v967_v4, %v936_v44  ;;  %v970_v62 = vadd.f32 %v968_v5, %v937_v3  ;;  %v1024_v63 = vmul.f32 %v1017_v47, %v1009_v43  ;;  %v1025_v11 = vmul.f32 %v1021_v48, %v1010_v7 }
 0x50c   : > { %v1040_v13 = vpop.permute.xlu1 %1039  ;;  %v1033_v14 = vmul.f32 %v1491_v36, %v1024_v63  ;;  %v1034_v15 = vmul.f32 %v1491_v36, %v1025_v11  ;;  %v1002_v17 = vadd.f32 %v1000_v12, %v969_v10  ;;  %v1003_v18 = vadd.f32 %v1001_v34, %v970_v62 }
 0x50d   : > { %v1042_v52 = vsel %vm1041_vm11, %v1038_v23, %v1040_v13  ;;  %v1043_v58 = vsel %vm1041_vm11, %v1040_v13, %v1038_v23 }
 0x50e   : > { %v1057_v45 = vmul.f32 %v1050_v8, %v1042_v52  ;;  %v1058_v16 = vmul.f32 %v1054_v9, %v1043_v58  ;;  %v1035_v20 = vadd.f32 %v1033_v14, %v1002_v17  ;;  %v1036_v21 = vadd.f32 %v1034_v15, %v1003_v18 }
 0x510   : > { %v1066_v19 = vmul.f32 %v1493_v37, %v1057_v45  ;;  %v1067_v35 = vmul.f32 %v1493_v37, %v1058_v16 }
 0x512   : > { %v1068_v22 = vadd.f32 %v1066_v19, %v1035_v20  ;;  %v1069_v24 = vadd.f32 %v1067_v35, %v1036_v21 }
 0x515   : > { %v1074_v36 = vpop.permute.xlu0 %1073 }
 0x516   : > { %v1076_v26 = vadd.f32 %v1074_v36, %v1068_v22  ;;  %v1077_v28 = vadd.f32 %v1074_v36, %v1069_v24 }
 0x518   : > { %v1078_v33 = vmax.f32 %v1076_v26, 0.0  ;;  %v1079_v38 = vmax.f32 %v1077_v28, 0.0 }
 0x51a   : > { %v1080_v42 = vadd.f32 %v1078_v33, %v1460_v25  ;;  %v1081_v23 = vadd.f32 %v1079_v38, %v1468_v27 }
 0x51c   : > { %1082 = vst [vmem:[%s484_s23] sm:$0xff] %v1080_v42  ;;  %1083 = vst [vmem:[%s484_s23 + $0x8] sm:$0xff] %v1081_v23 }
 0x51d PF: > { %s24_s29 = sadd.s32 1, %s1232_s29  }
 0x51e   : > { %p21_p4 = scmp.ge.s32.totalorder %s24_s29, 4  }
 0x520   :  { %23 = sbr.rel (!%p21_p4) target bundleno = 1 (0x1), region = 124 }

</bundles_post_ra>
